<compile_context>
chip_gen: v7x
topology: tpu7x:2x2x1
jax: 0.10.0
libtpu: 0.0.40
codegen_flags: <defaults>
</compile_context>

<pallas_src>
import functools

import numpy as np
import jax
import jax.numpy as jnp
from jax.experimental import pallas as pl
from jax.experimental.pallas import tpu as pltpu


def _shift1(a, d, axis):
    """s[..., i, ...] = a[..., i+d, ...] with zero fill outside range (|d| <= 1).

    Implemented as a static slice + concat with a zero strip, keeping the
    1-pixel conv halo entirely in register/VMEM values (no padded scratch).
    # TODO(synk): pltpu.roll + broadcasted_iota mask would move these shifts to
    # the otherwise-idle XLU slot; slice+concat is used for unambiguous semantics.
    """
    if d == 0:
        return a
    n = a.shape[axis]
    zshape = list(a.shape)
    zshape[axis] = abs(d)
    zeros = jnp.zeros(zshape, a.dtype)
    idx = [slice(None)] * a.ndim
    if d > 0:
        idx[axis] = slice(d, n)
        return jnp.concatenate([a[tuple(idx)], zeros], axis=axis)
    idx[axis] = slice(0, n + d)
    return jnp.concatenate([zeros, a[tuple(idx)]], axis=axis)


def _disp_head_kernel(w_ref, b_ref, x_ref, *rest, scale):
    """conv3x3(pad=1, out_ch=1) -> sigmoid -> bilinear x`scale` upsample.

    w_ref   (C*9,)        SMEM  conv weights, [c, kh, kw] order
    b_ref   (1,)          SMEM  conv bias
    x_ref   (bt, C, H, W) VMEM  batch tile
    scale > 1:
      ah_ref  (Ho, H)     VMEM  bilinear row-interpolation matrix
      awt_ref (W, Wo)     VMEM  bilinear col-interpolation matrix (transposed)
      o_ref   (bt*Ho, Wo) VMEM  output block (row-major == NCHW output)
    scale == 1:
      o_ref   (bt, H, W)  VMEM  output block
    """
    if scale > 1:
        ah_ref, awt_ref, o_ref = rest
    else:
        (o_ref,) = rest

    bt, C, H, W = x_ref.shape
    f32 = jnp.float32

    # --- 3x3 conv, single output channel -------------------------------------
    # Shifts commute with the channel reduction, so first build the 9 per-tap
    # channel-weighted maps t_k = sum_c w[c,k] * x[:, c].  These are 9
    # *independent* accumulation chains (plenty of VALU ILP, unlike the old
    # single 9*C-long chain); the 1-pixel zero-fill shifts are then applied
    # once per tap on single-channel maps.
    # TODO(synk): for large C (default input_dim=100+) move the channel
    # reduction onto the MXU as a channels-last (bt*H*W, C) @ (C, 9) matmul and
    # wrap the channel loop in lax.fori_loop(unroll=4); at tiny C the VALU path
    # below is cheaper and simpler.
    taps = [None] * 9
    for c in range(C):
        xc = x_ref[:, c]                              # (bt, H, W)
        for k in range(9):
            term = w_ref[c * 9 + k] * xc
            taps[k] = term if taps[k] is None else taps[k] + term

    acc = None
    for kh in range(3):
        row = (_shift1(taps[kh * 3 + 0], -1, 2)
               + taps[kh * 3 + 1]
               + _shift1(taps[kh * 3 + 2], +1, 2))
        row = _shift1(row, kh - 1, 1)
        acc = row if acc is None else acc + row

    y = jax.nn.sigmoid(acc + b_ref[0])                # (bt, H, W) f32

    # --- bilinear upsample (align_corners=False) ------------------------------
    if scale > 1:
        Ho = ah_ref.shape[0]
        # Row upsample of the whole batch tile as one batched contraction
        # (removes the per-image dot + concatenate), then a single
        # (bt*Ho, W) @ (W, Wo) matmul whose result is exactly the NCHW
        # row-major output slab.
        ah = jnp.broadcast_to(ah_ref[...], (bt, Ho, H))
        uh = jnp.einsum("bij,bjk->bik", ah, y,
                        preferred_element_type=f32)    # (bt, Ho, W)
        uh = uh.reshape(bt * Ho, W)
        # TODO(synk): for Wo < 128 the final store is lane-masked; a lane-dense
        # output restructuring (folding batch/columns into the matmul N) is the
        # next lever for tiny feature maps.
        o_ref[...] = jnp.dot(uh, awt_ref[...],
                             preferred_element_type=f32)   # (bt*Ho, Wo)
    else:
        o_ref[...] = y


def _bilinear_matrix(in_size, scale):
    """Row-interp matrix matching F.interpolate(bilinear, align_corners=False)."""
    out_size = in_size * int(scale)
    dst = np.arange(out_size)
    src = (dst + 0.5) / float(scale) - 0.5
    src = np.maximum(src, 0.0)                 # PyTorch clamps negative src to 0
    i0 = np.clip(np.floor(src).astype(np.int64), 0, in_size - 1)
    i1 = np.minimum(i0 + 1, in_size - 1)
    frac = (src - i0).astype(np.float32)
    A = np.zeros((out_size, in_size), dtype=np.float32)
    A[dst, i0] += (1.0 - frac)
    A[dst, i1] += frac
    return A


def _round_up(n, m):
    return ((n + m - 1) // m) * m


def _tpu_generation():
    try:
        kind = jax.devices()[0].device_kind.lower()
    except Exception:
        return None
    for tag in ("v7", "v6", "v5"):
        if tag in kind:
            return tag
    return None


def _pick_batch_tile(B, C, H, W, s, gen):
    """Images per grid step, (possibly padded) batch, and scoped-VMEM limit."""
    Ho, Wo = H * s, W * s
    Hr, Wr = _round_up(H, 8), _round_up(W, 128)
    Hor, Wor = _round_up(Ho, 8), _round_up(Wo, 128)
    out_tile = Hor * Wor if s > 1 else Hr * Wr
    # Per-image VMEM: double-buffered input/output blocks (BlockSpec pipelining)
    # plus in-kernel temporaries (9 tap maps, shifted rows, conv result, and the
    # row-upsampled intermediate), all rounded to (8, 128) tiles.
    per_img = 4 * (2 * C * Hr * Wr + 2 * out_tile + 14 * Hr * Wr
                   + (Hor * Wr if s > 1 else 0))
    fixed = 0
    if s > 1:   # interpolation matrices (also double buffered)
        fixed = 4 * 2 * (Hor * _round_up(H, 128) + _round_up(W, 8) * Wor)

    if gen in ("v5", "v6"):
        # Single TensorCore, 128 MiB physical VMEM: fewer, bigger grid steps.
        budget, vmem_limit, keep_two_steps = 40 << 20, 96 << 20, False
    else:
        # v7x (64 MiB per TC, 2 TCs) or unknown: conservative working set and
        # keep >=2 grid steps so the "parallel" axis can shard across cores.
        budget, vmem_limit, keep_two_steps = 24 << 20, 48 << 20, True

    cap = max(1, min(B, (budget - fixed) // max(per_img, 1)))
    if keep_two_steps and B >= 2:
        cap = min(cap, max(1, B // 2))

    bt = max(d for d in range(1, cap + 1) if B % d == 0)
    B_pad = B
    if bt * 2 <= cap:              # awkward/prime B: pad the batch instead of
        bt = cap                   # degrading to tiny per-step tiles
        B_pad = _round_up(B, bt)
    return bt, B_pad, vmem_limit


def disp_head_forward(x, weight, bias, scale):
    """Pallas DispHead forward.

    x: (B, C, H, W) f32, weight: (1, C, 3, 3) f32, bias: (1,) f32.
    Returns (B, 1, H*s, W*s) with s = int(scale) if scale > 1 else 1.
    """
    B, C, H, W = x.shape
    if scale > 1:
        s = int(scale)
        if s != scale:
            # TODO(synk): fractional F.interpolate scale factors not implemented.
            raise NotImplementedError("only integer upsample scales > 1 supported")
    else:
        s = 1                                  # module skips the upsample entirely
    Ho, Wo = H * s, W * s

    bt, B_pad, vmem_limit = _pick_batch_tile(B, C, H, W, s, _tpu_generation())

    x = x.astype(jnp.float32)
    if B_pad != B:
        x = jnp.pad(x, ((0, B_pad - B), (0, 0), (0, 0), (0, 0)))
    w_flat = weight.reshape(C * 9).astype(jnp.float32)        # [c, kh, kw] order
    b_vec = bias.reshape(1).astype(jnp.float32)

    in_specs = [
        pl.BlockSpec(memory_space=pltpu.MemorySpace.SMEM),     # conv weights
        pl.BlockSpec(memory_space=pltpu.MemorySpace.SMEM),     # conv bias
        pl.BlockSpec((bt, C, H, W), lambda i: (i, 0, 0, 0)),   # batch tile
    ]
    args = [w_flat, b_vec, x]

    if s > 1:
        A_h = jnp.asarray(_bilinear_matrix(H, s))              # (Ho, H)
        A_wT = jnp.asarray(_bilinear_matrix(W, s).T)           # (W, Wo)
        in_specs += [pl.BlockSpec((Ho, H), lambda i: (0, 0)),
                     pl.BlockSpec((W, Wo), lambda i: (0, 0))]
        args += [A_h, A_wT]
        # One contiguous (bt*Ho, Wo) slab per step; row-major identical to the
        # (B, 1, Ho, Wo) result, so the reshape below is free in HBM.
        out_shape = jax.ShapeDtypeStruct((B_pad * Ho, Wo), jnp.float32)
        out_specs = pl.BlockSpec((bt * Ho, Wo), lambda i: (i, 0))
    else:
        out_shape = jax.ShapeDtypeStruct((B_pad, H, W), jnp.float32)
        out_specs = pl.BlockSpec((bt, H, W), lambda i: (i, 0, 0))

    out = pl.pallas_call(
        functools.partial(_disp_head_kernel, scale=s),
        out_shape=out_shape,
        grid=(B_pad // bt,),
        in_specs=in_specs,
        out_specs=out_specs,
        compiler_params=pltpu.CompilerParams(
            dimension_semantics=("parallel",),
            vmem_limit_bytes=vmem_limit),
    )(*args)

    if s > 1:
        return out[:B * Ho].reshape(B, 1, Ho, Wo)
    return out[:B].reshape(B, 1, H, W)


def disp_head_reference(x, weight, bias, scale):
    """Pure-JAX reference mirroring the PyTorch module."""
    y = jax.lax.conv_general_dilated(
        x, weight, window_strides=(1, 1), padding="SAME",
        dimension_numbers=("NCHW", "OIHW", "NCHW"))
    y = jax.nn.sigmoid(y + bias.reshape(1, 1, 1, 1))
    if scale > 1:
        s = int(scale)
        A_h = jnp.asarray(_bilinear_matrix(y.shape[2], s))
        A_w = jnp.asarray(_bilinear_matrix(y.shape[3], s))
        y = jnp.einsum("oh,bchw,pw->bcop", A_h, y, A_w)
    return y


if __name__ == "__main__":
    key = jax.random.PRNGKey(0)
    k_x, k_w, k_b = jax.random.split(key, 3)

    B, C, H, W = 2, 4, 16, 16
    scale = 2

    x = jax.random.normal(k_x, (B, C, H, W), dtype=jnp.float32)
    # Deterministic init mimicking nn.Conv2d default (uniform in +-1/sqrt(fan_in)).
    fan_in = C * 3 * 3
    bound = 1.0 / np.sqrt(fan_in)
    weight = jax.random.uniform(k_w, (1, C, 3, 3), jnp.float32, -bound, bound)
    bias = jax.random.uniform(k_b, (1,), jnp.float32, -bound, bound)

    out = disp_head_forward(x, weight, bias, scale)
    out = jax.block_until_ready(out)

    ref = disp_head_reference(x, weight, bias, scale)
    assert out.shape == (B, 1, H * scale, W * scale), out.shape
    np.testing.assert_allclose(np.asarray(out), np.asarray(ref),
                               atol=1e-5, rtol=1e-5)
    print("KERNEL_OK")
</pallas_src>

<mosaic_0001>
module attributes {stable_mosaic.version = 11 : i64} {
  func.func @_disp_head_kernel(%arg0: i32, %arg1: memref<36xf32, #tpu.memory_space<smem>>, %arg2: memref<1xf32, #tpu.memory_space<smem>>, %arg3: memref<1x4x16x16xf32, #tpu.memory_space<vmem>>, %arg4: memref<32x16xf32, #tpu.memory_space<vmem>>, %arg5: memref<16x32xf32, #tpu.memory_space<vmem>>, %arg6: memref<32x32xf32, #tpu.memory_space<vmem>>) attributes {dimension_semantics = [#tpu.dimension_semantics<parallel>], iteration_bounds = array<i64: 2>, scalar_prefetch = 0 : i64, scratch_operands = 0 : i64, tpu.core_type = #tpu.core_type<tc>, window_params = [{transform_indices = @transform_0, window_bounds = array<i64: 36>}, {transform_indices = @transform_1, window_bounds = array<i64: 1>}, {transform_indices = @transform_2, window_bounds = array<i64: 1, 4, 16, 16>}, {pipeline_mode = #tpu.pipeline_mode<synchronous>, transform_indices = @transform_3, window_bounds = array<i64: 32, 16>}, {pipeline_mode = #tpu.pipeline_mode<synchronous>, transform_indices = @transform_4, window_bounds = array<i64: 16, 32>}, {transform_indices = @transform_5, window_bounds = array<i64: 32, 32>}]} {
    %c0 = arith.constant 0 : index
    %c0_0 = arith.constant 0 : index
    %c0_1 = arith.constant 0 : index
    %c0_2 = arith.constant 0 : index
    %0 = vector.load %arg3[%c0, %c0_0, %c0_1, %c0_2] : memref<1x4x16x16xf32, #tpu.memory_space<vmem>>, vector<1x1x16x16xf32>
    %1 = vector.shape_cast %0 : vector<1x1x16x16xf32> to vector<1x16x16xf32>
    %c0_3 = arith.constant 0 : index
    %2 = memref.load %arg1[%c0_3] : memref<36xf32, #tpu.memory_space<smem>>
    %3 = vector.broadcast %2 : f32 to vector<1x16x16xf32>
    %4 = arith.mulf %3, %1 : vector<1x16x16xf32>
    %c1 = arith.constant 1 : index
    %5 = memref.load %arg1[%c1] : memref<36xf32, #tpu.memory_space<smem>>
    %6 = vector.broadcast %5 : f32 to vector<1x16x16xf32>
    %7 = arith.mulf %6, %1 : vector<1x16x16xf32>
    %c2 = arith.constant 2 : index
    %8 = memref.load %arg1[%c2] : memref<36xf32, #tpu.memory_space<smem>>
    %9 = vector.broadcast %8 : f32 to vector<1x16x16xf32>
    %10 = arith.mulf %9, %1 : vector<1x16x16xf32>
    %c3 = arith.constant 3 : index
    %11 = memref.load %arg1[%c3] : memref<36xf32, #tpu.memory_space<smem>>
    %12 = vector.broadcast %11 : f32 to vector<1x16x16xf32>
    %13 = arith.mulf %12, %1 : vector<1x16x16xf32>
    %c4 = arith.constant 4 : index
    %14 = memref.load %arg1[%c4] : memref<36xf32, #tpu.memory_space<smem>>
    %15 = vector.broadcast %14 : f32 to vector<1x16x16xf32>
    %16 = arith.mulf %15, %1 : vector<1x16x16xf32>
    %c5 = arith.constant 5 : index
    %17 = memref.load %arg1[%c5] : memref<36xf32, #tpu.memory_space<smem>>
    %18 = vector.broadcast %17 : f32 to vector<1x16x16xf32>
    %19 = arith.mulf %18, %1 : vector<1x16x16xf32>
    %c6 = arith.constant 6 : index
    %20 = memref.load %arg1[%c6] : memref<36xf32, #tpu.memory_space<smem>>
    %21 = vector.broadcast %20 : f32 to vector<1x16x16xf32>
    %22 = arith.mulf %21, %1 : vector<1x16x16xf32>
    %c7 = arith.constant 7 : index
    %23 = memref.load %arg1[%c7] : memref<36xf32, #tpu.memory_space<smem>>
    %24 = vector.broadcast %23 : f32 to vector<1x16x16xf32>
    %25 = arith.mulf %24, %1 : vector<1x16x16xf32>
    %c8 = arith.constant 8 : index
    %26 = memref.load %arg1[%c8] : memref<36xf32, #tpu.memory_space<smem>>
    %27 = vector.broadcast %26 : f32 to vector<1x16x16xf32>
    %28 = arith.mulf %27, %1 : vector<1x16x16xf32>
    %c0_4 = arith.constant 0 : index
    %c1_5 = arith.constant 1 : index
    %c0_6 = arith.constant 0 : index
    %c0_7 = arith.constant 0 : index
    %29 = vector.load %arg3[%c0_4, %c1_5, %c0_6, %c0_7] : memref<1x4x16x16xf32, #tpu.memory_space<vmem>>, vector<1x1x16x16xf32>
    %30 = vector.shape_cast %29 : vector<1x1x16x16xf32> to vector<1x16x16xf32>
    %c9 = arith.constant 9 : index
    %31 = memref.load %arg1[%c9] : memref<36xf32, #tpu.memory_space<smem>>
    %32 = vector.broadcast %31 : f32 to vector<1x16x16xf32>
    %33 = arith.mulf %32, %30 : vector<1x16x16xf32>
    %34 = arith.addf %4, %33 : vector<1x16x16xf32>
    %c10 = arith.constant 10 : index
    %35 = memref.load %arg1[%c10] : memref<36xf32, #tpu.memory_space<smem>>
    %36 = vector.broadcast %35 : f32 to vector<1x16x16xf32>
    %37 = arith.mulf %36, %30 : vector<1x16x16xf32>
    %38 = arith.addf %7, %37 : vector<1x16x16xf32>
    %c11 = arith.constant 11 : index
    %39 = memref.load %arg1[%c11] : memref<36xf32, #tpu.memory_space<smem>>
    %40 = vector.broadcast %39 : f32 to vector<1x16x16xf32>
    %41 = arith.mulf %40, %30 : vector<1x16x16xf32>
    %42 = arith.addf %10, %41 : vector<1x16x16xf32>
    %c12 = arith.constant 12 : index
    %43 = memref.load %arg1[%c12] : memref<36xf32, #tpu.memory_space<smem>>
    %44 = vector.broadcast %43 : f32 to vector<1x16x16xf32>
    %45 = arith.mulf %44, %30 : vector<1x16x16xf32>
    %46 = arith.addf %13, %45 : vector<1x16x16xf32>
    %c13 = arith.constant 13 : index
    %47 = memref.load %arg1[%c13] : memref<36xf32, #tpu.memory_space<smem>>
    %48 = vector.broadcast %47 : f32 to vector<1x16x16xf32>
    %49 = arith.mulf %48, %30 : vector<1x16x16xf32>
    %50 = arith.addf %16, %49 : vector<1x16x16xf32>
    %c14 = arith.constant 14 : index
    %51 = memref.load %arg1[%c14] : memref<36xf32, #tpu.memory_space<smem>>
    %52 = vector.broadcast %51 : f32 to vector<1x16x16xf32>
    %53 = arith.mulf %52, %30 : vector<1x16x16xf32>
    %54 = arith.addf %19, %53 : vector<1x16x16xf32>
    %c15 = arith.constant 15 : index
    %55 = memref.load %arg1[%c15] : memref<36xf32, #tpu.memory_space<smem>>
    %56 = vector.broadcast %55 : f32 to vector<1x16x16xf32>
    %57 = arith.mulf %56, %30 : vector<1x16x16xf32>
    %58 = arith.addf %22, %57 : vector<1x16x16xf32>
    %c16 = arith.constant 16 : index
    %59 = memref.load %arg1[%c16] : memref<36xf32, #tpu.memory_space<smem>>
    %60 = vector.broadcast %59 : f32 to vector<1x16x16xf32>
    %61 = arith.mulf %60, %30 : vector<1x16x16xf32>
    %62 = arith.addf %25, %61 : vector<1x16x16xf32>
    %c17 = arith.constant 17 : index
    %63 = memref.load %arg1[%c17] : memref<36xf32, #tpu.memory_space<smem>>
    %64 = vector.broadcast %63 : f32 to vector<1x16x16xf32>
    %65 = arith.mulf %64, %30 : vector<1x16x16xf32>
    %66 = arith.addf %28, %65 : vector<1x16x16xf32>
    %c0_8 = arith.constant 0 : index
    %c2_9 = arith.constant 2 : index
    %c0_10 = arith.constant 0 : index
    %c0_11 = arith.constant 0 : index
    %67 = vector.load %arg3[%c0_8, %c2_9, %c0_10, %c0_11] : memref<1x4x16x16xf32, #tpu.memory_space<vmem>>, vector<1x1x16x16xf32>
    %68 = vector.shape_cast %67 : vector<1x1x16x16xf32> to vector<1x16x16xf32>
    %c18 = arith.constant 18 : index
    %69 = memref.load %arg1[%c18] : memref<36xf32, #tpu.memory_space<smem>>
    %70 = vector.broadcast %69 : f32 to vector<1x16x16xf32>
    %71 = arith.mulf %70, %68 : vector<1x16x16xf32>
    %72 = arith.addf %34, %71 : vector<1x16x16xf32>
    %c19 = arith.constant 19 : index
    %73 = memref.load %arg1[%c19] : memref<36xf32, #tpu.memory_space<smem>>
    %74 = vector.broadcast %73 : f32 to vector<1x16x16xf32>
    %75 = arith.mulf %74, %68 : vector<1x16x16xf32>
    %76 = arith.addf %38, %75 : vector<1x16x16xf32>
    %c20 = arith.constant 20 : index
    %77 = memref.load %arg1[%c20] : memref<36xf32, #tpu.memory_space<smem>>
    %78 = vector.broadcast %77 : f32 to vector<1x16x16xf32>
    %79 = arith.mulf %78, %68 : vector<1x16x16xf32>
    %80 = arith.addf %42, %79 : vector<1x16x16xf32>
    %c21 = arith.constant 21 : index
    %81 = memref.load %arg1[%c21] : memref<36xf32, #tpu.memory_space<smem>>
    %82 = vector.broadcast %81 : f32 to vector<1x16x16xf32>
    %83 = arith.mulf %82, %68 : vector<1x16x16xf32>
    %84 = arith.addf %46, %83 : vector<1x16x16xf32>
    %c22 = arith.constant 22 : index
    %85 = memref.load %arg1[%c22] : memref<36xf32, #tpu.memory_space<smem>>
    %86 = vector.broadcast %85 : f32 to vector<1x16x16xf32>
    %87 = arith.mulf %86, %68 : vector<1x16x16xf32>
    %88 = arith.addf %50, %87 : vector<1x16x16xf32>
    %c23 = arith.constant 23 : index
    %89 = memref.load %arg1[%c23] : memref<36xf32, #tpu.memory_space<smem>>
    %90 = vector.broadcast %89 : f32 to vector<1x16x16xf32>
    %91 = arith.mulf %90, %68 : vector<1x16x16xf32>
    %92 = arith.addf %54, %91 : vector<1x16x16xf32>
    %c24 = arith.constant 24 : index
    %93 = memref.load %arg1[%c24] : memref<36xf32, #tpu.memory_space<smem>>
    %94 = vector.broadcast %93 : f32 to vector<1x16x16xf32>
    %95 = arith.mulf %94, %68 : vector<1x16x16xf32>
    %96 = arith.addf %58, %95 : vector<1x16x16xf32>
    %c25 = arith.constant 25 : index
    %97 = memref.load %arg1[%c25] : memref<36xf32, #tpu.memory_space<smem>>
    %98 = vector.broadcast %97 : f32 to vector<1x16x16xf32>
    %99 = arith.mulf %98, %68 : vector<1x16x16xf32>
    %100 = arith.addf %62, %99 : vector<1x16x16xf32>
    %c26 = arith.constant 26 : index
    %101 = memref.load %arg1[%c26] : memref<36xf32, #tpu.memory_space<smem>>
    %102 = vector.broadcast %101 : f32 to vector<1x16x16xf32>
    %103 = arith.mulf %102, %68 : vector<1x16x16xf32>
    %104 = arith.addf %66, %103 : vector<1x16x16xf32>
    %c0_12 = arith.constant 0 : index
    %c3_13 = arith.constant 3 : index
    %c0_14 = arith.constant 0 : index
    %c0_15 = arith.constant 0 : index
    %105 = vector.load %arg3[%c0_12, %c3_13, %c0_14, %c0_15] : memref<1x4x16x16xf32, #tpu.memory_space<vmem>>, vector<1x1x16x16xf32>
    %106 = vector.shape_cast %105 : vector<1x1x16x16xf32> to vector<1x16x16xf32>
    %c27 = arith.constant 27 : index
    %107 = memref.load %arg1[%c27] : memref<36xf32, #tpu.memory_space<smem>>
    %108 = vector.broadcast %107 : f32 to vector<1x16x16xf32>
    %109 = arith.mulf %108, %106 : vector<1x16x16xf32>
    %110 = arith.addf %72, %109 : vector<1x16x16xf32>
    %c28 = arith.constant 28 : index
    %111 = memref.load %arg1[%c28] : memref<36xf32, #tpu.memory_space<smem>>
    %112 = vector.broadcast %111 : f32 to vector<1x16x16xf32>
    %113 = arith.mulf %112, %106 : vector<1x16x16xf32>
    %114 = arith.addf %76, %113 : vector<1x16x16xf32>
    %c29 = arith.constant 29 : index
    %115 = memref.load %arg1[%c29] : memref<36xf32, #tpu.memory_space<smem>>
    %116 = vector.broadcast %115 : f32 to vector<1x16x16xf32>
    %117 = arith.mulf %116, %106 : vector<1x16x16xf32>
    %118 = arith.addf %80, %117 : vector<1x16x16xf32>
    %c30 = arith.constant 30 : index
    %119 = memref.load %arg1[%c30] : memref<36xf32, #tpu.memory_space<smem>>
    %120 = vector.broadcast %119 : f32 to vector<1x16x16xf32>
    %121 = arith.mulf %120, %106 : vector<1x16x16xf32>
    %122 = arith.addf %84, %121 : vector<1x16x16xf32>
    %c31 = arith.constant 31 : index
    %123 = memref.load %arg1[%c31] : memref<36xf32, #tpu.memory_space<smem>>
    %124 = vector.broadcast %123 : f32 to vector<1x16x16xf32>
    %125 = arith.mulf %124, %106 : vector<1x16x16xf32>
    %126 = arith.addf %88, %125 : vector<1x16x16xf32>
    %c32 = arith.constant 32 : index
    %127 = memref.load %arg1[%c32] : memref<36xf32, #tpu.memory_space<smem>>
    %128 = vector.broadcast %127 : f32 to vector<1x16x16xf32>
    %129 = arith.mulf %128, %106 : vector<1x16x16xf32>
    %130 = arith.addf %92, %129 : vector<1x16x16xf32>
    %c33 = arith.constant 33 : index
    %131 = memref.load %arg1[%c33] : memref<36xf32, #tpu.memory_space<smem>>
    %132 = vector.broadcast %131 : f32 to vector<1x16x16xf32>
    %133 = arith.mulf %132, %106 : vector<1x16x16xf32>
    %134 = arith.addf %96, %133 : vector<1x16x16xf32>
    %c34 = arith.constant 34 : index
    %135 = memref.load %arg1[%c34] : memref<36xf32, #tpu.memory_space<smem>>
    %136 = vector.broadcast %135 : f32 to vector<1x16x16xf32>
    %137 = arith.mulf %136, %106 : vector<1x16x16xf32>
    %138 = arith.addf %100, %137 : vector<1x16x16xf32>
    %c35 = arith.constant 35 : index
    %139 = memref.load %arg1[%c35] : memref<36xf32, #tpu.memory_space<smem>>
    %140 = vector.broadcast %139 : f32 to vector<1x16x16xf32>
    %141 = arith.mulf %140, %106 : vector<1x16x16xf32>
    %142 = arith.addf %104, %141 : vector<1x16x16xf32>
    %cst = arith.constant 0.000000e+00 : f32
    %143 = vector.broadcast %cst : f32 to vector<1x16x1xf32>
    %144 = vector.extract_strided_slice %110 {offsets = [0, 0, 0], sizes = [1, 16, 15], strides = [1, 1, 1]} : vector<1x16x16xf32> to vector<1x16x15xf32>
    %145 = tpu.concatenate %143, %144 in 2 : vector<1x16x1xf32>, vector<1x16x15xf32> -> vector<1x16x16xf32>
    %146 = arith.addf %145, %114 : vector<1x16x16xf32>
    %cst_16 = arith.constant 0.000000e+00 : f32
    %147 = vector.broadcast %cst_16 : f32 to vector<1x16x1xf32>
    %148 = vector.extract_strided_slice %118 {offsets = [0, 0, 1], sizes = [1, 16, 15], strides = [1, 1, 1]} : vector<1x16x16xf32> to vector<1x16x15xf32>
    %149 = tpu.concatenate %148, %147 in 2 : vector<1x16x15xf32>, vector<1x16x1xf32> -> vector<1x16x16xf32>
    %150 = arith.addf %146, %149 : vector<1x16x16xf32>
    %cst_17 = arith.constant 0.000000e+00 : f32
    %151 = vector.broadcast %cst_17 : f32 to vector<1x1x16xf32>
    %152 = vector.extract_strided_slice %150 {offsets = [0, 0, 0], sizes = [1, 15, 16], strides = [1, 1, 1]} : vector<1x16x16xf32> to vector<1x15x16xf32>
    %153 = tpu.concatenate %151, %152 in 1 : vector<1x1x16xf32>, vector<1x15x16xf32> -> vector<1x16x16xf32>
    %cst_18 = arith.constant 0.000000e+00 : f32
    %154 = vector.broadcast %cst_18 : f32 to vector<1x16x1xf32>
    %155 = vector.extract_strided_slice %122 {offsets = [0, 0, 0], sizes = [1, 16, 15], strides = [1, 1, 1]} : vector<1x16x16xf32> to vector<1x16x15xf32>
    %156 = tpu.concatenate %154, %155 in 2 : vector<1x16x1xf32>, vector<1x16x15xf32> -> vector<1x16x16xf32>
    %157 = arith.addf %156, %126 : vector<1x16x16xf32>
    %cst_19 = arith.constant 0.000000e+00 : f32
    %158 = vector.broadcast %cst_19 : f32 to vector<1x16x1xf32>
    %159 = vector.extract_strided_slice %130 {offsets = [0, 0, 1], sizes = [1, 16, 15], strides = [1, 1, 1]} : vector<1x16x16xf32> to vector<1x16x15xf32>
    %160 = tpu.concatenate %159, %158 in 2 : vector<1x16x15xf32>, vector<1x16x1xf32> -> vector<1x16x16xf32>
    %161 = arith.addf %157, %160 : vector<1x16x16xf32>
    %162 = arith.addf %153, %161 : vector<1x16x16xf32>
    %cst_20 = arith.constant 0.000000e+00 : f32
    %163 = vector.broadcast %cst_20 : f32 to vector<1x16x1xf32>
    %164 = vector.extract_strided_slice %134 {offsets = [0, 0, 0], sizes = [1, 16, 15], strides = [1, 1, 1]} : vector<1x16x16xf32> to vector<1x16x15xf32>
    %165 = tpu.concatenate %163, %164 in 2 : vector<1x16x1xf32>, vector<1x16x15xf32> -> vector<1x16x16xf32>
    %166 = arith.addf %165, %138 : vector<1x16x16xf32>
    %cst_21 = arith.constant 0.000000e+00 : f32
    %167 = vector.broadcast %cst_21 : f32 to vector<1x16x1xf32>
    %168 = vector.extract_strided_slice %142 {offsets = [0, 0, 1], sizes = [1, 16, 15], strides = [1, 1, 1]} : vector<1x16x16xf32> to vector<1x16x15xf32>
    %169 = tpu.concatenate %168, %167 in 2 : vector<1x16x15xf32>, vector<1x16x1xf32> -> vector<1x16x16xf32>
    %170 = arith.addf %166, %169 : vector<1x16x16xf32>
    %cst_22 = arith.constant 0.000000e+00 : f32
    %171 = vector.broadcast %cst_22 : f32 to vector<1x1x16xf32>
    %172 = vector.extract_strided_slice %170 {offsets = [0, 1, 0], sizes = [1, 15, 16], strides = [1, 1, 1]} : vector<1x16x16xf32> to vector<1x15x16xf32>
    %173 = tpu.concatenate %172, %171 in 1 : vector<1x15x16xf32>, vector<1x1x16xf32> -> vector<1x16x16xf32>
    %174 = arith.addf %162, %173 : vector<1x16x16xf32>
    %c0_23 = arith.constant 0 : index
    %175 = memref.load %arg2[%c0_23] : memref<1xf32, #tpu.memory_space<smem>>
    %176 = vector.broadcast %175 : f32 to vector<1x16x16xf32>
    %177 = arith.addf %174, %176 : vector<1x16x16xf32>
    %178 = arith.negf %177 : vector<1x16x16xf32>
    %179 = math.exp %178 : vector<1x16x16xf32>
    %cst_24 = arith.constant 1.000000e+00 : f32
    %180 = vector.broadcast %cst_24 : f32 to vector<1x16x16xf32>
    %181 = arith.addf %180, %179 : vector<1x16x16xf32>
    %182 = arith.divf %180, %181 : vector<1x16x16xf32>
    %c0_25 = arith.constant 0 : index
    %c0_26 = arith.constant 0 : index
    %183 = vector.load %arg4[%c0_25, %c0_26] : memref<32x16xf32, #tpu.memory_space<vmem>>, vector<32x16xf32>
    %184 = vector.shape_cast %183 : vector<32x16xf32> to vector<1x32x16xf32>
    "tpu.trace_start"() <{level = 10 : i32, message = "bij,bjk->bik"}> : () -> ()
    %cst_27 = arith.constant dense<0.000000e+00> : vector<1x32x16xf32>
    %185 = tpu.matmul %184, %182, %cst_27 {dimension_numbers = #tpu.dot_dimension_numbers<[2], [1], [1], [2], [0, 0, 0, 1, 1, 2], [0], [0]>} : vector<1x32x16xf32>, vector<1x16x16xf32>, vector<1x32x16xf32> -> vector<1x32x16xf32>
    "tpu.trace_stop"() : () -> ()
    %186 = vector.shape_cast %185 : vector<1x32x16xf32> to vector<32x16xf32>
    %c0_28 = arith.constant 0 : index
    %c0_29 = arith.constant 0 : index
    %187 = vector.load %arg5[%c0_28, %c0_29] : memref<16x32xf32, #tpu.memory_space<vmem>>, vector<16x32xf32>
    %cst_30 = arith.constant dense<0.000000e+00> : vector<32x32xf32>
    %188 = tpu.matmul %186, %187, %cst_30 {dimension_numbers = #tpu.dot_dimension_numbers<[1], [0], [0], [1], [0, 0, 1, 1], [], []>} : vector<32x16xf32>, vector<16x32xf32>, vector<32x32xf32> -> vector<32x32xf32>
    %c0_31 = arith.constant 0 : index
    %c0_32 = arith.constant 0 : index
    %189 = vector.load %arg6[%c0_31, %c0_32] : memref<32x32xf32, #tpu.memory_space<vmem>>, vector<32x32xf32>
    tpu.vector_store %arg6[%c0_31, %c0_32], %188 {strides = array<i32>} : memref<32x32xf32, #tpu.memory_space<vmem>>, vector<32x32xf32>,
    return
  }
  func.func @transform_0(%arg0: i32) -> i32 {
    %c0_i32 = arith.constant 0 : i32
    %c0_i32_0 = arith.constant 0 : i32
    return %c0_i32 : i32
  }
  func.func @transform_1(%arg0: i32) -> i32 {
    %c0_i32 = arith.constant 0 : i32
    %c0_i32_0 = arith.constant 0 : i32
    return %c0_i32 : i32
  }
  func.func @transform_2(%arg0: i32) -> (i32, i32, i32, i32) {
    %c0_i32 = arith.constant 0 : i32
    %c0_i32_0 = arith.constant 0 : i32
    %c0_i32_1 = arith.constant 0 : i32
    %c0_i32_2 = arith.constant 0 : i32
    return %arg0, %c0_i32, %c0_i32_0, %c0_i32_1 : i32, i32, i32, i32
  }
  func.func @transform_3(%arg0: i32) -> (i32, i32) {
    %c0_i32 = arith.constant 0 : i32
    %c0_i32_0 = arith.constant 0 : i32
    %c0_i32_1 = arith.constant 0 : i32
    return %c0_i32, %c0_i32_0 : i32, i32
  }
  func.func @transform_4(%arg0: i32) -> (i32, i32) {
    %c0_i32 = arith.constant 0 : i32
    %c0_i32_0 = arith.constant 0 : i32
    %c0_i32_1 = arith.constant 0 : i32
    return %c0_i32, %c0_i32_0 : i32, i32
  }
  func.func @transform_5(%arg0: i32) -> (i32, i32) {
    %c0_i32 = arith.constant 0 : i32
    %c0_i32_0 = arith.constant 0 : i32
    return %arg0, %c0_i32 : i32, i32
  }
}

</mosaic_0001>

<bundles_post_ra>
// kernel: tpu_custom_call.1
= control target key start
LH: loop header
LB: loop body
LE: loop exit
PB: predicated region body
PF: predicated region fallthrough
CT: control target
= control target key end

     0   :  { %s1532_s0 = inlined_call_operand.vmem [shape: f32[36], index: 0, kind: input, shape index: {}]   ;;  %s1533_s1 = inlined_call_operand.<no memory space> [shape: f32[1], index: 1, kind: input, shape index: {}]   ;;  %s1534_s2 = inlined_call_operand.hbm [shape: f32[2,4,16,16], index: 2, kind: input, shape index: {}]   ;;  %s1535_s3 = inlined_call_operand.vmem [shape: f32[32,16], index: 3, kind: input, shape index: {}]   ;;  %s1536_s4 = inlined_call_operand.vmem [shape: f32[16,32], index: 4, kind: input, shape index: {}]   ;;  %s1537_s5 = inlined_call_operand.vmem [shape: f32[64,32], index: 5, kind: output, shape index: {}]  }
   0x1   :  { %10 = sst [smem:[#allocation2]] %s1533_s1 }
   0x2   :  { %11 = vsyncpa [#allocation5], 0 }
   0x3   :  { %12 = vsyncpa [#allocation4], 0 }
   0x4   :  { %14 = vsyncpa [#allocation4 + $0x1], 0  ;;  %s1160_s20 = smov 0   ;;  %s1162_s21 = smov 0  }
   0x5   :  { %s1164_s22 = smov 0   ;;  %s1166_s23 = smov 0  }
   0x6 LB: > { %s867_s1 = sadd.s32 4294967295, %s1119_s23   ;;  %s1180_s24 = sadd.s32 1, %s1119_s23   ;;  %s1119_s23 = sphi %s1166_s23, %s1550_s23   ;;  %s1115_s22 = sphi %s1164_s22, %s1549_s22   ;;  %s1111_s21 = sphi %s1162_s21, %s1548_s21   ;;  %s1107_s20 = sphi %s1160_s20, %s1547_s20  }
   0x7   : > { %s66_s25 = ssub.s32 %s1119_s23, %s1180_s24  ;;  %s69_s26 = sadd.s32 1, %s1115_s22 }
   0x8   : > { %p67_p0 = scmp.eq.s32.totalorder %s66_s25, 0  ;;  %p76_p1 = scmp.ne.s32.totalorder %s1115_s22, %s1111_s21 }
   0x9   : > { %p77_p2 = scmp.eq.s32.totalorder %s1119_s23, 0  ;;  %p82_p3 = scmp.ne.s32.totalorder %s1111_s21, %s1107_s20 }
   0xa   : > { %s1190_s27 = scalar_select %p67_p0, %s1115_s22, %s69_s26  }
   0xb   : > { %p78_p4 = por %p77_p2, %p76_p1  ;;  %p1194_p5 = scmp.eq.s32.totalorder %s867_s1, 0 }
   0xc   : > { %p869_p6 = scmp.ge.s32.totalorder %s1119_s23, 1  ;;  %p161_p7 = scmp.lt.s32.totalorder %s1119_s23, 3 }
   0xd   : > { %p1202_p8 = por %p1194_p5, %p82_p3  ;;  %s174_s8 = sshll.u32 %s1532_s0, 4  ;;  %s175_s8 = int_to_ptr.vmem [resolvable:$true] %s174_s8 }
   0xe   : > { %p1206_p9 = pnand %p869_p6, %p161_p7  ;;  %p989_p11 = scmp.lt.s32.totalorder %s1119_s23, 2 }
   0xf   : > { %s1541_s29 = scalar_select %p1202_p8, 1, 0 }
  0x10   : > { %s1542_s30 = scalar_select %p1206_p9, 1, 0 }
  0x11   : > { %p980_p10 = pneg %p1206_p9  ;;  %s194_s9 = sand.u32 1, %s1115_s22  }
  0x12   : > { %p1223_p13 = pnand %p989_p11, %p78_p4  ;;  %s872_s12 = sshll.u32 %s194_s9, 6 }
  0x13   : > { %p1219_p12 = pnand %p980_p10, %p1194_p5  ;;  %s1036_s13 = scalar_lea.vmem %s175_s8, 16 }
  0x14   : > { %p1037_p0 = scmp.ne.s32.totalorder %s175_s8, %s1036_s13  ;;  %p1044_p6 = scmp.lt.s32.totalorder %s175_s8, %s175_s8 }
  0x15   : > { %p1038_p1 = pneg %p1219_p12  ;;  %p1045_p7 = scmp.lt.s32.totalorder %s1036_s13, %s1036_s13 }
  0x17   : > { %p1039_p2 = pnand %p1038_p1, %p1037_p0  ;;  %p1046_p8 = por %p1045_p7, %p1044_p6 }
  0x19   : > { %p1040_p3 = pneg %p1039_p2 }
  0x1b   : > { %p1047_p9 = pnand %p1046_p8, %p1040_p3 }
  0x1d   : > { %1050 = shalt.err (!%p1047_p9)
}
  0x1e   : > { %s1121_s14 = smov [#allocation3]   ;;  %s933_s15 = sshll.u32 %s1119_s23, 10 }
  0x1f   : > { %983 = dma.vmem_to_smem (!%p1219_p12), %s175_s8, 16, %s1121_s14, [#allocation5]  }
  0x20   : > { %s1235_s18 = scalar_lea.hbm %s1534_s2, %s933_s15  ;;  %s198_s19 = scalar_lea.vmem [#allocation6], %s872_s12 }
  0x21   : > { %s205_s20 = sshll.u32 %s198_s19, 4  ;;  %s1239_s25 = scalar_lea.sflag [#allocation4], %s194_s9  ;;  %s1237_s20 = int_to_ptr.vmem [resolvable:$true] %s205_s20 }
  0x22   : > { %s1051_s26 = scalar_lea.hbm %s1235_s18, 1024  ;;  %p1053_p8 = pneg %p1223_p13 }
  0x23   : > { %p1052_p4 = scmp.ne.s32.totalorder %s1235_s18, %s1051_s26  ;;  %s1056_s8 = scalar_lea.hbm %s1534_s2, 2048 }
  0x24   : > { %p1057_p11 = scmp.lt.u32.totalorder %s1235_s18, %s1534_s2  ;;  %p1058_p12 = scmp.lt.u32.totalorder %s1056_s8, %s1051_s26 }
  0x25   : > { %p1054_p9 = pnand %p1053_p8, %p1052_p4  ;;  %p1060_p1 = scmp.lt.u32.totalorder %s1051_s26, %s1235_s18 }
  0x26   : > { %p1059_p0 = por %p1058_p12, %p1057_p11 }
  0x27   : > { %p1055_p10 = pneg %p1054_p9 }
  0x28   : > { %p1061_p2 = por %p1060_p1, %p1059_p0 }
  0x2a   : > { %p1062_p3 = pnand %p1061_p2, %p1055_p10 }
  0x2c   : > { %1065 = shalt.err (!%p1062_p3)
}
  0x2d   : > { %s1066_s9 = scalar_lea.vmem %s1237_s20, 1024  ;;  %s1122_s12 = smov [#allocation6]  }
  0x2e   : > { %p1067_p6 = scmp.ne.s32.totalorder %s1237_s20, %s1066_s9  ;;  %s1071_s14 = sshll.u32 %s1122_s12, 4  ;;  %s1072_s14 = int_to_ptr.vmem [resolvable:$false] %s1071_s14 }
  0x2f   : > { %s1073_s15 = scalar_lea.vmem %s1072_s14, 2048  ;;  %p1074_p9 = scmp.lt.s32.totalorder %s1237_s20, %s1072_s14 }
  0x30   : > { %p1069_p7 = pnand %p1067_p6, %p1053_p8  ;;  %p1075_p11 = scmp.lt.s32.totalorder %s1073_s15, %s1066_s9 }
  0x32   : > { %p1070_p4 = pneg %p1069_p7  ;;  %p1076_p12 = por %p1075_p11, %p1074_p9 }
  0x34   : > { %p1077_p0 = pnand %p1076_p12, %p1070_p4 }
  0x36   : > { %1080 = shalt.err (!%p1077_p0)
}
  0x37   : > { %s1123_s16 = smov 128   ;;  %s1124_s17 = smov 8  }
  0x38   : > { %987 = dma.hbm_to_vmem [thread:$0]  (!%p1223_p13), %s1235_s18, 1024, %s1237_s20, %s1239_s25, %s1123_s16, %s1123_s16, %s1124_s17  }
  0x39   : > { %p1545_p8 = scmp.ne.s32.totalorder %s1542_s30, 0 }
  0x3b   : > { %217 = sbr.rel (%p1545_p8) target bundleno = 700 (0x2bc), region = 40 }
  0x42   : > { %1098 = dma.done.wait (%p1194_p5), [#allocation5], 16  }
  0x43   : > { %1100 = vsyncadd (%p1194_p5), [#allocation5], 4294967280  ;;  %s223_s19 = sand.u32 1, %s1111_s21   ;;  %p1546_p10 = scmp.ne.s32.totalorder %s1541_s29, 0 }
  0x44   : > { %s877_s26 = sshll.u32 %s223_s19, 6  ;;  %s224_s6 = scalar_lea.sflag [#allocation4], %s223_s19 }
  0x45   : > { %s227_s7 = scalar_lea.vmem [#allocation6], %s877_s26 }
  0x46   : > { %1102 = dma.done.wait (%p1546_p10), %s224_s6, 1024  }
  0x47   : > { %1104 = vsyncadd (%p1546_p10), %s224_s6, 4294966272 }
  0x48   : > { %232 = sfence }
  0x49   : > { %s881_s30 = sld [smem:[#allocation3 + $0x2]]  ;;  %s892_s11 = sld [smem:[#allocation3 + $0xb]]  ;;  %v1278_v0 = vld [vmem:[%s227_s7] sm:$0xff]  ;;  %v1284_v1 = vld [vmem:[%s227_s7 + $0x8] sm:$0xff]  ;;  %v1286_v2 = vld [vmem:[%s227_s7 + $0x10] sm:$0xff]  ;;  %vm586_vm0 = vcmask 130048  }
  0x4a   : > { %s903_s18 = sld [smem:[#allocation3 + $0x14]]  ;;  %s914_s20 = sld [smem:[#allocation3 + $0x1d]]  ;;  %v1292_v3 = vld [vmem:[%s227_s7 + $0x18] sm:$0xff]  ;;  %v1294_v4 = vld [vmem:[%s227_s7 + $0x20] sm:$0xff]  ;;  %v1296_v5 = vld [vmem:[%s227_s7 + $0x28] sm:$0xff]  ;;  %vm478_vm1 = vcmask 7168  }
  0x4b   : > { %s1280_s28 = sld [smem:[#allocation3]]  ;;  %s1282_s25 = sld [smem:[#allocation3 + $0x9]]  ;;  %v1298_v7 = vld [vmem:[%s227_s7 + $0x30] sm:$0xff]  ;;  %v1300_v8 = vld [vmem:[%s227_s7 + $0x38] sm:$0xff]  ;;  %vm491_vm2 = vcmask 121856   ;;  %vm498_vm3 = vcmask 1040384  }
  0x4c   : > { %s1288_s8 = sld [smem:[#allocation3 + $0x12]]  ;;  %s1290_s10 = sld [smem:[#allocation3 + $0x1b]]  ;;  %vm557_vm4 = vcmask 1046528   ;;  %vm783_vm5 = vcmask 261120  }
  0x4d   : > { %s1302_s29 = sld [smem:[#allocation3 + $0x6]]  ;;  %s1304_s13 = sld [smem:[#allocation3 + $0xf]] }
  0x4e   : > { %s1310_s9 = sld [smem:[#allocation3 + $0x18]]  ;;  %s1312_s12 = sld [smem:[#allocation3 + $0x21]] }
  0x4f   : > { %v272_v6 = vstv %s881_s30  ;;  %v315_v11 = vstv %s892_s11  ;;  %s1325_s14 = sld [smem:[#allocation3 + $0x3]]  ;;  %s1327_s15 = sld [smem:[#allocation3 + $0xc]] }
  0x50   : > { %v273_v9 = vmul.f32 %v272_v6, %v1278_v0  ;;  %v274_v10 = vmul.f32 %v272_v6, %v1284_v1  ;;  %v316_v12 = vmul.f32 %v1286_v2, %v315_v11  ;;  %v317_v13 = vmul.f32 %v1292_v3, %v315_v11  ;;  %s1332_s16 = sld [smem:[#allocation3 + $0x15]]  ;;  %s1336_s17 = sld [smem:[#allocation3 + $0x1e]] }
  0x51   : > { %v372_v14 = vstv %s903_s18  ;;  %v429_v15 = vstv %s914_s20  ;;  %v264_v21 = vstv %s1280_s28  ;;  %v303_v22 = vstv %s1282_s25  ;;  %s1342_s19 = sld [smem:[#allocation3 + $0x8]]  ;;  %s1344_s26 = sld [smem:[#allocation3 + $0x11]] }
  0x52   : > { %v373_v16 = vmul.f32 %v1294_v4, %v372_v14  ;;  %v374_v17 = vmul.f32 %v1296_v5, %v372_v14  ;;  %v430_v18 = vmul.f32 %v1298_v7, %v429_v15  ;;  %v431_v19 = vmul.f32 %v1300_v8, %v429_v15  ;;  %s1125_s6 = smov 127   ;;  %s1351_s7 = sld [smem:[#allocation3 + $0x1a]] }
  0x53   : > { %v318_v20 = vadd.f32 %v316_v12, %v273_v9  ;;  %v360_v23 = vstv %s1288_s8  ;;  %v265_v24 = vmul.f32 %v264_v21, %v1278_v0  ;;  %v266_v25 = vmul.f32 %v264_v21, %v1284_v1  ;;  %s1353_s30 = sld [smem:[#allocation3 + $0x23]]  ;;  %s1126_s11 = smov 1  }
  0x54   : > { %v304_v26 = vmul.f32 %v1286_v2, %v303_v22  ;;  %v305_v27 = vmul.f32 %v1292_v3, %v303_v22  ;;  %v361_v29 = vmul.f32 %v1294_v4, %v360_v23  ;;  %v362_v30 = vmul.f32 %v1296_v5, %v360_v23  ;;  %s1362_s18 = sld [smem:[#allocation3 + $0x5]]  ;;  %s1368_s20 = sld [smem:[#allocation3 + $0xe]] }
  0x55   : > { %v375_v28 = vadd.f32 %v373_v16, %v318_v20  ;;  %v417_v31 = vstv %s1290_s10  ;;  %v319_v35 = vadd.f32 %v317_v13, %v274_v10  ;;  %v288_v38 = vstv %s1302_s29  ;;  %s1370_s28 = sld [smem:[#allocation3 + $0x17]]  ;;  %s1377_s25 = sld [smem:[#allocation3 + $0x20]] }
  0x56   : > { %v306_v32 = vadd.f32 %v304_v26, %v265_v24  ;;  %v418_v33 = vmul.f32 %v1298_v7, %v417_v31  ;;  %v419_v34 = vmul.f32 %v1300_v8, %v417_v31  ;;  %v307_v37 = vadd.f32 %v305_v27, %v266_v25  ;;  %s1386_s8 = sld [smem:[#allocation3 + $0x1]]  ;;  %s1392_s10 = sld [smem:[#allocation3 + $0xa]] }
  0x57   : > { %v432_v36 = vadd.f32 %v430_v18, %v375_v28  ;;  %v339_v39 = vstv %s1304_s13  ;;  %v376_v41 = vadd.f32 %v374_v17, %v319_v35  ;;  %v290_v42 = vmul.f32 %v288_v38, %v1284_v1  ;;  %s1396_s29 = sld [smem:[#allocation3 + $0x13]]  ;;  %s1398_s13 = sld [smem:[#allocation3 + $0x1c]] }
  0x58   : > { %v363_v40 = vadd.f32 %v361_v29, %v306_v32  ;;  %v341_v43 = vmul.f32 %v1292_v3, %v339_v39  ;;  %v364_v44 = vadd.f32 %v362_v30, %v307_v37  ;;  %v396_v45 = vstv %s1310_s9  ;;  %s1408_s9 = sld [smem:[#allocation3 + $0x7]] }
  0x59   : > { %485 = vrot.lane.b32.xlu1 %v432_v36, %s1125_s6  ;;  %v453_v46 = vstv %s1312_s12  ;;  %v289_v47 = vmul.f32 %v288_v38, %v1278_v0  ;;  %v433_v49 = vadd.f32 %v431_v19, %v376_v41  ;;  %v398_v51 = vmul.f32 %v1296_v5, %v396_v45  ;;  %s1412_s12 = sld [smem:[#allocation3 + $0x10]] }
  0x5a   : > { %v420_v48 = vadd.f32 %v418_v33, %v363_v40  ;;  %v343_v50 = vadd.f32 %v341_v43, %v290_v42  ;;  %v421_v52 = vadd.f32 %v419_v34, %v364_v44  ;;  %v455_v53 = vmul.f32 %v1300_v8, %v453_v46 }
  0x5b   : > { %v340_v54 = vmul.f32 %v1286_v2, %v339_v39  ;;  %v397_v55 = vmul.f32 %v1294_v4, %v396_v45  ;;  %v454_v57 = vmul.f32 %v1298_v7, %v453_v46  ;;  %v276_v58 = vstv %s1325_s14  ;;  %s1414_s14 = sld [smem:[#allocation3 + $0x19]] }
  0x5c   : > { %472 = vrot.lane.b32.xlu0 %v420_v48, %s1126_s11  ;;  %v400_v56 = vadd.f32 %v398_v51, %v343_v50  ;;  %v321_v59 = vstv %s1327_s15  ;;  %v278_v61 = vmul.f32 %v276_v58, %v1284_v1  ;;  %v378_v63 = vstv %s1332_s16  ;;  %s1422_s15 = sld [smem:[#allocation3 + $0x22]]  ;;  %s1430_s16 = sld [smem:[#allocation3 + $0x4]] }
  0x5d   : > { %487 = vrot.lane.b32.xlu1 %v433_v49, %s1125_s6  ;;  %v342_v60 = vadd.f32 %v340_v54, %v289_v47  ;;  %v323_v62 = vmul.f32 %v1292_v3, %v321_v59  ;;  %v380_v9 = vmul.f32 %v1296_v5, %v378_v63  ;;  %v435_v10 = vstv %s1336_s17  ;;  %s1435_s17 = sld [smem:[#allocation3 + $0xd]] }
  0x5e   : > { %v457_v6 = vadd.f32 %v455_v53, %v400_v56  ;;  %v277_v11 = vmul.f32 %v276_v58, %v1278_v0  ;;  %v437_v14 = vmul.f32 %v1300_v8, %v435_v10  ;;  %v322_v15 = vmul.f32 %v1286_v2, %v321_v59 }
  0x5f   : > { %v399_v12 = vadd.f32 %v397_v55, %v342_v60  ;;  %v325_v13 = vadd.f32 %v323_v62, %v278_v61  ;;  %v379_v16 = vmul.f32 %v1294_v4, %v378_v63  ;;  %v436_v17 = vmul.f32 %v1298_v7, %v435_v10 }
  0x60   : > { %474 = vrot.lane.b32.xlu0 %v421_v52, %s1126_s11  ;;  %v296_v18 = vstv %s1342_s19  ;;  %v351_v19 = vstv %s1344_s26  ;;  %v324_v22 = vadd.f32 %v322_v15, %v277_v11  ;;  %v408_v25 = vstv %s1351_s7  ;;  %s1441_s19 = sld [smem:[#allocation3 + $0x16]]  ;;  %s1443_s26 = sld [smem:[#allocation3 + $0x1f]] }
  0x61   : > { %535 = vrot.lane.b32.xlu1 %v457_v6, %s1126_s11  ;;  %v456_v20 = vadd.f32 %v454_v57, %v399_v12  ;;  %v382_v21 = vadd.f32 %v380_v9, %v325_v13  ;;  %v298_v23 = vmul.f32 %v296_v18, %v1284_v1  ;;  %v353_v24 = vmul.f32 %v1292_v3, %v351_v19 }
  0x62   : > { %v465_v26 = vstv %s1353_s30  ;;  %v297_v27 = vmul.f32 %v296_v18, %v1278_v0  ;;  %v381_v29 = vadd.f32 %v379_v16, %v324_v22  ;;  %v410_v30 = vmul.f32 %v1296_v5, %v408_v25 }
  0x63   : > { %v439_v28 = vadd.f32 %v437_v14, %v382_v21  ;;  %v467_v31 = vmul.f32 %v1300_v8, %v465_v26  ;;  %v355_v32 = vadd.f32 %v353_v24, %v298_v23  ;;  %v352_v33 = vmul.f32 %v1286_v2, %v351_v19 }
  0x64   : > { %533 = vrot.lane.b32.xlu0 %v456_v20, %s1126_s11  ;;  %v409_v34 = vmul.f32 %v1294_v4, %v408_v25  ;;  %v466_v35 = vmul.f32 %v1298_v7, %v465_v26  ;;  %v438_v36 = vadd.f32 %v436_v17, %v381_v29  ;;  %v284_v37 = vstv %s1362_s18 }
  0x65   : > { %509 = vrot.lane.b32.xlu1 %v439_v28, %s1126_s11  ;;  %v333_v38 = vstv %s1368_s20  ;;  %v390_v39 = vstv %s1370_s28  ;;  %v412_v40 = vadd.f32 %v410_v30, %v355_v32  ;;  %v354_v41 = vadd.f32 %v352_v33, %v297_v27  ;;  %s566_s28 = sld [smem:[#allocation2]] }
  0x66   : > { %v286_v42 = vmul.f32 %v284_v37, %v1284_v1  ;;  %v335_v43 = vmul.f32 %v1292_v3, %v333_v38  ;;  %v392_v44 = vmul.f32 %v1296_v5, %v390_v39  ;;  %v447_v45 = vstv %s1377_s25 }
  0x67   : > { %v285_v46 = vmul.f32 %v284_v37, %v1278_v0  ;;  %v334_v47 = vmul.f32 %v1286_v2, %v333_v38  ;;  %v469_v48 = vadd.f32 %v467_v31, %v412_v40  ;;  %v411_v49 = vadd.f32 %v409_v34, %v354_v41 }
  0x68   : > { %507 = vrot.lane.b32.xlu0 %v438_v36, %s1126_s11  ;;  %v337_v50 = vadd.f32 %v335_v43, %v286_v42  ;;  %v449_v51 = vmul.f32 %v1300_v8, %v447_v45  ;;  %v391_v53 = vmul.f32 %v1294_v4, %v390_v39  ;;  %v448_v54 = vmul.f32 %v1298_v7, %v447_v45 }
  0x69   : > { %v336_v52 = vadd.f32 %v334_v47, %v285_v46  ;;  %v268_v55 = vstv %s1386_s8  ;;  %547 = vrot.lane.b32.xlu1 %v469_v48, %s1125_s6  ;;  %v468_v56 = vadd.f32 %v466_v35, %v411_v49  ;;  %v309_v59 = vstv %s1392_s10 }
  0x6a   : > { %v394_v57 = vadd.f32 %v392_v44, %v337_v50  ;;  %v269_v58 = vmul.f32 %v268_v55, %v1278_v0  ;;  %v310_v61 = vmul.f32 %v1286_v2, %v309_v59  ;;  %v366_v62 = vstv %s1396_s29 }
  0x6b   : > { %v393_v60 = vadd.f32 %v391_v53, %v336_v52  ;;  %v423_v63 = vstv %s1398_s13  ;;  %v367_v9 = vmul.f32 %v1294_v4, %v366_v62  ;;  %v270_v11 = vmul.f32 %v268_v55, %v1284_v1 }
  0x6c   : > { %545 = vrot.lane.b32.xlu0 %v468_v56, %s1125_s6  ;;  %v451_v6 = vadd.f32 %v449_v51, %v394_v57  ;;  %v424_v10 = vmul.f32 %v1298_v7, %v423_v63  ;;  %v312_v13 = vadd.f32 %v310_v61, %v269_v58  ;;  %v311_v14 = vmul.f32 %v1292_v3, %v309_v59 }
  0x6d   : > { %v450_v12 = vadd.f32 %v448_v54, %v393_v60  ;;  %v368_v15 = vmul.f32 %v1296_v5, %v366_v62  ;;  %v425_v16 = vmul.f32 %v1300_v8, %v423_v63  ;;  %v292_v17 = vstv %s1408_s9 }
  0x6e   : > { %521 = vrot.lane.b32.xlu1 %v451_v6, %s1125_s6  ;;  %v345_v18 = vstv %s1412_s12  ;;  %v402_v19 = vstv %s1414_s14  ;;  %v369_v20 = vadd.f32 %v367_v9, %v312_v13  ;;  %v313_v21 = vadd.f32 %v311_v14, %v270_v11  ;;  %s878_s12 = sshll.u32 %s867_s1, 2 }
  0x6f   : > { %v294_v22 = vmul.f32 %v292_v17, %v1284_v1  ;;  %v347_v23 = vmul.f32 %v1292_v3, %v345_v18  ;;  %v404_v24 = vmul.f32 %v1296_v5, %v402_v19  ;;  %v459_v25 = vstv %s1422_s15  ;;  %p256_p5 = scmp.lt.s32.totalorder %s878_s12, 7 }
  0x70   : > { %519 = vrot.lane.b32.xlu0 %v450_v12, %s1125_s6  ;;  %v293_v26 = vmul.f32 %v292_v17, %v1278_v0  ;;  %v346_v27 = vmul.f32 %v1286_v2, %v345_v18  ;;  %v426_v28 = vadd.f32 %v424_v10, %v369_v20  ;;  %v370_v29 = vadd.f32 %v368_v15, %v313_v21 }
  0x71   : > { %v349_v30 = vadd.f32 %v347_v23, %v294_v22  ;;  %v461_v31 = vmul.f32 %v1300_v8, %v459_v25  ;;  %v403_v33 = vmul.f32 %v1294_v4, %v402_v19  ;;  %v460_v34 = vmul.f32 %v1298_v7, %v459_v25  ;;  %s1552_s12 = smov (!%p256_p5, %s878_s12), 7 }
  0x72   : > { %v348_v32 = vadd.f32 %v346_v27, %v293_v26  ;;  %v280_v35 = vstv %s1430_s16  ;;  %v427_v36 = vadd.f32 %v425_v16, %v370_v29  ;;  %v327_v39 = vstv %s1435_s17  ;;  %s879_s14 = sshll.u32 %s1552_s12, 3 }
  0x73   : > { %v406_v37 = vadd.f32 %v404_v24, %v349_v30  ;;  %v282_v38 = vmul.f32 %v280_v35, %v1284_v1  ;;  %v329_v41 = vmul.f32 %v1292_v3, %v327_v39  ;;  %v384_v42 = vstv %s1441_s19  ;;  %s259_s17 = scalar_lea.vmem %s1537_s5, %s879_s14 }
  0x74   : > { %v405_v40 = vadd.f32 %v403_v33, %v348_v32  ;;  %v441_v43 = vstv %s1443_s26  ;;  %v386_v45 = vmul.f32 %v1296_v5, %v384_v42  ;;  %v281_v47 = vmul.f32 %v280_v35, %v1278_v0  ;;  %v582_v5 = vld [vmem:[%s1535_s3] sm:$0xff] }
  0x75   : > { %v463_v44 = vadd.f32 %v461_v31, %v406_v37  ;;  %v443_v46 = vmul.f32 %v1300_v8, %v441_v43  ;;  %v331_v49 = vadd.f32 %v329_v41, %v282_v38  ;;  %v328_v50 = vmul.f32 %v1286_v2, %v327_v39  ;;  %950 = vmatprep.mubr.msk.f32.mxu0 %vm586_vm0, %v582_v5  ;;  %v684_v0 = vld [vmem:[%s1536_s4] sm:$0xff]  ;;  %v685_v2 = vld [vmem:[%s1536_s4 + $0x8] sm:$0xff] }
  0x76   : > { %v462_v48 = vadd.f32 %v460_v34, %v405_v40  ;;  %v385_v51 = vmul.f32 %v1294_v4, %v384_v42  ;;  %v442_v53 = vmul.f32 %v1298_v7, %v441_v43  ;;  %v970_v4 = vpack.c.bf16 %v685_v2, %v684_v0  ;;  %v583_v5 = vld [vmem:[%s1535_s3 + $0x8] sm:$0xff]  ;;  %v584_v0 = vld [vmem:[%s1535_s3 + $0x10] sm:$0xff]  ;;  %v585_v2 = vld [vmem:[%s1535_s3 + $0x18] sm:$0xff] }
  0x77   : > { %v388_v1 = vadd.f32 %v386_v45, %v331_v49  ;;  %v330_v52 = vadd.f32 %v328_v50, %v281_v47  ;;  %v567_v42 = vstv %s566_s28 }
  0x78   : > { %971 = vmatprep.subr.bf16.mxu1 %v970_v4 }
  0x79   : > { %v445_v3 = vadd.f32 %v443_v46, %v388_v1  ;;  %v387_v54 = vadd.f32 %v385_v51, %v330_v52  ;;  %973 = vmatpush3.bf16.msra.mxu1 %v970_v4 }
  0x7b   : > { %v444_v55 = vadd.f32 %v442_v53, %v387_v54 }
  0xcb   : > { %v486_v7 = vpop.permute.xlu1 %485 }
  0xcc   : > { %v492_v60 = vsel %vm491_vm2, %v486_v7, 0.0 }
  0xce   : > { %v473_v8 = vpop.permute.xlu0 %472 }
  0xcf   : > { %v479_v56 = vsel %vm478_vm1, 0.0, %v473_v8  ;;  %v488_v57 = vpop.permute.xlu1 %487 }
  0xd0   : > { %v481_v58 = vadd.f32 %v479_v56, %v426_v28  ;;  %v493_v9 = vsel %vm491_vm2, %v488_v57, 0.0 }
  0xd2   : > { %v475_v59 = vpop.permute.xlu0 %474  ;;  %v494_v63 = vadd.f32 %v492_v60, %v481_v58 }
  0xd3   : > { %v480_v61 = vsel %vm478_vm1, 0.0, %v475_v59  ;;  %v536_v62 = vpop.permute.xlu1 %535 }
  0xd4   : > { %v482_v6 = vadd.f32 %v480_v61, %v427_v36  ;;  %v499_v13 = vrot.slane %v494_v63, 7  ;;  %v540_v15 = vsel %vm478_vm1, 0.0, %v536_v62 }
  0xd5   : > { %v542_v19 = vadd.f32 %v540_v15, %v463_v44 }
  0xd6   : > { %v495_v10 = vadd.f32 %v493_v9, %v482_v6  ;;  %v534_v11 = vpop.permute.xlu0 %533  ;;  %v504_v43 = vsel %vm498_vm3, 0.0, %v499_v13 }
  0xd7   : > { %v510_v12 = vpop.permute.xlu1 %509  ;;  %v539_v18 = vsel %vm478_vm1, 0.0, %v534_v11 }
  0xd8   : > { %v500_v14 = vrot.slane %v495_v10, 7  ;;  %v514_v21 = vsel %vm478_vm1, 0.0, %v510_v12  ;;  %v541_v23 = vadd.f32 %v539_v18, %v462_v48 }
  0xd9   : > { %v516_v28 = vadd.f32 %v514_v21, %v445_v3 }
  0xda   : > { %v508_v16 = vpop.permute.xlu0 %507  ;;  %v501_v17 = vsel %vm498_vm3, %v499_v13, %v500_v14 }
  0xdb   : > { %v548_v20 = vpop.permute.xlu1 %547  ;;  %v513_v26 = vsel %vm478_vm1, 0.0, %v508_v16 }
  0xdc   : > { %v552_v22 = vsel %vm491_vm2, %v548_v20, 0.0  ;;  %v515_v33 = vadd.f32 %v513_v26, %v444_v55 }
  0xdd   : > { %v554_v24 = vadd.f32 %v552_v22, %v542_v19 }
  0xde   : > { %v546_v25 = vpop.permute.xlu0 %545 }
  0xdf   : > { %v551_v27 = vsel %vm491_vm2, %v546_v25, 0.0  ;;  %v559_v29 = vrot.slane %v554_v24, 1 }
  0xe0   : > { %v553_v30 = vadd.f32 %v551_v27, %v541_v23  ;;  %v522_v31 = vpop.permute.xlu1 %521 }
  0xe1   : > { %v526_v32 = vsel %vm491_vm2, %v522_v31, 0.0  ;;  %v563_v41 = vsel %vm557_vm4, %v559_v29, 0.0 }
  0xe2   : > { %v558_v34 = vrot.slane %v553_v30, 1  ;;  %v528_v35 = vadd.f32 %v526_v32, %v516_v28  ;;  %v520_v36 = vpop.permute.xlu0 %519 }
  0xe3   : > { %v525_v37 = vsel %vm491_vm2, %v520_v36, 0.0 }
  0xe4   : > { %v530_v38 = vadd.f32 %v528_v35, %v501_v17  ;;  %v560_v39 = vsel %vm557_vm4, %v558_v34, %v559_v29  ;;  %v527_v40 = vadd.f32 %v525_v37, %v515_v33 }
  0xe6   : > { %v565_v44 = vadd.f32 %v563_v41, %v530_v38  ;;  %v529_v45 = vadd.f32 %v527_v40, %v504_v43 }
  0xe8   : > { %v569_v46 = vadd.f32 %v567_v42, %v565_v44  ;;  %v564_v47 = vadd.f32 %v560_v39, %v529_v45 }
  0xea   : > { %v922_v48 = vmul.f32 -1.442695, %v569_v46  ;;  %v568_v49 = vadd.f32 %v567_v42, %v564_v47 }
  0xec   : > { %1028 = vpow2.f32 %v922_v48  ;;  %v921_v50 = vmul.f32 -1.442695, %v568_v49 }
  0xee   : > { %1030 = vpow2.f32 %v921_v50 }
  0xf6   : > { %v1029_v51 = vpop.eup %1028 }
  0xf7   : > { %v577_v1 = vadd.f32 1.0, %v1029_v51 }
  0xf8   : > { %v1031_v52 = vpop.eup %1030 }
  0xf9   : > { %1032 = vrcp.f32 %v577_v1  ;;  %v576_v53 = vadd.f32 1.0, %v1031_v52 }
  0xfb   : > { %1034 = vrcp.f32 %v576_v53 }
 0x103   : > { %v1033_v3 = vpop.eup %1032 }
 0x105   : > { %v1035_v54 = vpop.eup %1034 }
 0x106   : > { %v966_v55 = vpack.c.bf16 %v1033_v3, %v1035_v54 }
 0x108   : > { %967 = vmatprep.subr.bf16.mxu0 %v966_v55 }
 0x109   : > { %969 = vmatpush3.bf16.msra.mxu0 %v966_v55 }
 0x10c   : > { %951 = vmatmul.mubr.msk.f32.vlgmr.msra.gmra.mrb[0].mxu0 %vm586_vm0, %v583_v5 }
 0x10d   : > { %953 = vmatprep.mubr.msk.f32.mxu0 %vm586_vm0, %v584_v0 }
 0x110   : > { %954 = vmatmul.mubr.msk.f32.gmra.mrb[2].mxu0 %vm586_vm0, %v585_v2 }
 0x1df   : > { %v952_v4 = vpop.f32.mrb[0].mxu0 }
 0x1e0   : > { %v665_v7 = vpop.f32.mrb[1].mxu0 }
 0x1e1   : > { %960 = vmatprep.mubr.msk.f32.mxu1 %vm586_vm0, %v665_v7 }
 0x1e2   : > { %961 = vmatmul.mubr.msk.f32.vlgmr.msra.gmra.mrb[0].mxu1 %vm586_vm0, %v952_v4 }
 0x1e3   : > { %v955_v8 = vpop.f32.mrb[2].mxu0 }
 0x1e4   : > { %v675_v56 = vpop.f32.mrb[3].mxu0 }
 0x1e5   : > { %963 = vmatprep.mubr.msk.f32.mxu1 %vm586_vm0, %v675_v56 }
 0x1e6   : > { %964 = vmatmul.mubr.msk.f32.gmra.mrb[2].mxu1 %vm586_vm0, %v955_v8 }
 0x2b5   : > { %v962_v57 = vpop.f32.mrb[0].mxu1 }
 0x2b6   : > { %v764_v58 = vpop.f32.mrb[1].mxu1  ;;  %785 = vst.msk [vmem:[%s259_s17 + $0x8] sm:$0xff] %vm783_vm5, %v962_v57 }
 0x2b7   : > { %784 = vst.msk [vmem:[%s259_s17] sm:$0xff] %vm783_vm5, %v764_v58 }
 0x2b9   : > { %v965_v59 = vpop.f32.mrb[2].mxu1 }
 0x2ba   : > { %v774_v60 = vpop.f32.mrb[3].mxu1  ;;  %787 = vst.msk [vmem:[%s259_s17 + $0x18] sm:$0xff] %vm783_vm5, %v965_v59 }
 0x2bb   : > { %786 = vst.msk [vmem:[%s259_s17 + $0x10] sm:$0xff] %vm783_vm5, %v774_v60 }
 0x2bc PF: > { %p17_p13 = scmp.ge.s32.totalorder %s1180_s24, 4   ;;  %s1547_s20 = smov %s1111_s21 }
 0x2bd   : > { %s1548_s21 = smov %s1115_s22  ;;  %s1549_s22 = smov %s1190_s27 }
 0x2be   : > { %s1550_s23 = smov %s1180_s24  ;;  %19 = sbr.rel (!%p17_p13) target bundleno = 6 (0x6), region = 88 }
 0x2c5   :  { %810 = vsyncpa [#allocation4], 1 }
 0x2c6   :  { %812 = vsyncpa [#allocation4 + $0x1], 1 }
 0x2c7   :  { %813 = vsyncpa [#allocation5], 1 }
 0x2c8   :  { %815 = vsyncpa [#allocation5 + $0x1], 1 }

</bundles_post_ra>
